<compile_context>
chip_gen: v7x
topology: tpu7x:2x2x1
jax: 0.10.0
libtpu: 0.0.40
codegen_flags: <defaults>
</compile_context>

<pallas_src>
import functools

import jax
import jax.numpy as jnp
from jax import lax
from jax.experimental import pallas as pl
from jax.experimental.pallas import tpu as pltpu


def _myloss_kernel(nns_t_ref, out_t_ref, w_ref,
                   scal_ref, bw_ref,
                   *, bs, k, n, n_bins, kk):
    nns_t = nns_t_ref[...]          # (k, bs)      int32 neighbor row indices
    outs_t = out_t_ref[...]         # (n_bins, n)  f32 "probabilities", transposed
    w = w_ref[...]                  # (1, bs)      f32 per-point weights

    # Single bin iota reused for both one-hots (wrapper asserts n == bs).
    bin_iota = lax.broadcasted_iota(jnp.int32, (n_bins, n), 0)

    # ---- per-row best bin of `outputs` as a one-hot (n_bins, n) bf16 matrix ----
    # first-occurrence argmax = max + masked-iota-min over the sublane axis.
    row_max = jnp.max(outs_t, axis=0, keepdims=True)                      # (1, n)
    row_best = jnp.min(
        jnp.where(outs_t == row_max, bin_iota, jnp.int32(n_bins)),
        axis=0, keepdims=True)                                            # (1, n)
    row_best_oh_t = (bin_iota == row_best).astype(jnp.bfloat16)           # (n_bins, n)

    # ---- neighbor-row counts C_T[r, b] = #{ki : nns[b, ki] == r} (exact in bf16) ----
    row_iota = lax.broadcasted_iota(jnp.int32, (n, bs), 0)
    cmat_t = (row_iota == nns_t[0:1, :]).astype(jnp.bfloat16)
    for ki in range(1, k):                                                # k small & static
        cmat_t = cmat_t + (row_iota == nns_t[ki:ki + 1, :]).astype(jnp.bfloat16)

    # ---- single MXU matmul: votes_T[j, b] = #neighbors of b whose best bin is j ----
    votes_t = jnp.dot(row_best_oh_t, cmat_t,
                      preferred_element_type=jnp.float32)                 # (n_bins, bs)

    # majority vote (torch.mode): smallest modal bin == first-max of counts.
    vmax = jnp.max(votes_t, axis=0, keepdims=True)                        # (1, bs)
    majority = jnp.min(
        jnp.where(votes_t == vmax, bin_iota, jnp.int32(n_bins)),
        axis=0, keepdims=True)                                            # (1, bs)
    maj_oh_t = (bin_iota == majority).astype(jnp.float32)                 # (n_bins, bs)

    # ---- weighted cross entropy: log only on the bs selected probabilities ----
    batch_outs_t = outs_t[:, :bs]                                         # (n_bins, bs)
    p_maj = jnp.sum(maj_oh_t * batch_outs_t, axis=0, keepdims=True)       # (1, bs)
    booster = -jnp.log(p_maj + 1e-9)                                      # (1, bs) lane-dense
    bw_ref[...] = booster
    diff_sum = jnp.sum(w * booster) / bs

    # ---- b = -sum(topk(batch_outs, k=bs//n_bins, dim=0)) / bs ----
    # points already sit on the lane axis -> pure lane reductions; each step
    # is one fused max + masked-iota-min + mask-out of the first occurrence.
    vals = batch_outs_t
    pt_iota = lax.broadcasted_iota(jnp.int32, (n_bins, bs), 1)
    top_sum = jnp.float32(0.0)
    for _ in range(kk):                                                   # kk small & static
        cur_max = jnp.max(vals, axis=1, keepdims=True)                    # (n_bins, 1)
        top_sum = top_sum + jnp.sum(cur_max)
        arg = jnp.min(
            jnp.where(vals == cur_max, pt_iota, jnp.int32(bs)),
            axis=1, keepdims=True)                                        # (n_bins, 1)
        vals = jnp.where(pt_iota == arg, -jnp.inf, vals)
    b = -top_sum / bs

    scal_ref[0] = 7.0 * b + diff_sum   # loss combined in-kernel
    scal_ref[1] = diff_sum
    scal_ref[2] = b


def my_loss(outputs, y, weights):
    """Pallas equivalent of MyLoss.forward(outputs, y, weights) with
    calculate_add=True, calculate_booster_weights=False."""
    n, n_bins = outputs.shape
    bs, k = y.shape
    assert n == bs, "torch broadcast weights*(1,n_bins,bs) requires n == batch_size"
    kk = int(bs / n_bins)

    # layout plumbing stays in the wrapper (kernel runs lane-dense, transposed)
    nns_t = jnp.trunc(y).astype(jnp.int32).T              # (k, bs)
    outs_t = outputs.astype(jnp.float32).T                # (n_bins, n)
    w_row = weights.reshape(1, bs).astype(jnp.float32)    # (1, bs)

    kernel = functools.partial(_myloss_kernel, bs=bs, k=k, n=n,
                               n_bins=n_bins, kk=kk)
    scal, booster = pl.pallas_call(
        kernel,
        out_shape=(
            jax.ShapeDtypeStruct((3,), jnp.float32),      # [loss, diff_sum, b]
            jax.ShapeDtypeStruct((1, bs), jnp.float32),   # booster_weights (lane-dense)
        ),
        in_specs=[
            pl.BlockSpec(memory_space=pltpu.MemorySpace.VMEM),
            pl.BlockSpec(memory_space=pltpu.MemorySpace.VMEM),
            pl.BlockSpec(memory_space=pltpu.MemorySpace.VMEM),
        ],
        out_specs=(
            pl.BlockSpec(memory_space=pltpu.MemorySpace.SMEM),
            pl.BlockSpec(memory_space=pltpu.MemorySpace.VMEM),
        ),
    )(nns_t, outs_t, w_row)

    return scal[0], scal[1], scal[2], 0, booster.reshape(bs)


def _ref_loss(outputs, y, weights):
    """Pure-JAX reference mirroring the PyTorch forward."""
    nns = jnp.trunc(y).astype(jnp.int32)
    bs, k = nns.shape
    n, n_bins = outputs.shape
    neigh = outputs[nns]                                           # (bs, k, n_bins)
    bins = jnp.argmax(neigh, axis=2)                               # (bs, k)
    counts = jnp.sum(jax.nn.one_hot(bins, n_bins, dtype=jnp.int32), axis=1)
    majority = jnp.argmax(counts, axis=1)
    maj_oh = jax.nn.one_hot(majority, n_bins, dtype=jnp.float32)
    batch_outs = outputs[:bs]
    ce = -maj_oh * jnp.log(batch_outs + 1e-9)
    diff_sum = jnp.sum(weights[:, None] * ce) / bs
    booster = jnp.sum(ce, axis=1)
    kk = int(bs / n_bins)
    b_top = -jnp.sort(-batch_outs, axis=0)[:kk]
    b = -jnp.sum(b_top) / bs
    return 7.0 * b + diff_sum, diff_sum, b, booster


if __name__ == "__main__":
    key = jax.random.PRNGKey(0)
    for (n, n_bins, bs, kn) in [(8, 4, 8, 4), (16, 8, 16, 5), (128, 8, 128, 10)]:
        k1, k2, k3, key = jax.random.split(key, 4)

        outputs = jax.nn.softmax(
            jax.random.normal(k1, (n, n_bins), jnp.float32), axis=-1)
        y = jax.random.uniform(k2, (bs, kn), jnp.float32,
                               minval=0.0, maxval=float(n))
        weights = jax.random.uniform(k3, (n,), jnp.float32,
                                     minval=0.5, maxval=1.5)

        loss, diff_sum, b, zero, booster = my_loss(outputs, y, weights)
        jax.block_until_ready((loss, diff_sum, b, booster))

        r_loss, r_diff, r_b, r_boost = _ref_loss(outputs, y, weights)
        assert jnp.allclose(loss, r_loss, atol=1e-5), (loss, r_loss)
        assert jnp.allclose(diff_sum, r_diff, atol=1e-5), (diff_sum, r_diff)
        assert jnp.allclose(b, r_b, atol=1e-5), (b, r_b)
        assert jnp.allclose(booster, r_boost, atol=1e-5)
        assert zero == 0

    print("KERNEL_OK")
</pallas_src>

<mosaic_0001>
module attributes {stable_mosaic.version = 11 : i64} {
  func.func @_myloss_kernel(%arg0: memref<4x8xi32, #tpu.memory_space<vmem>>, %arg1: memref<4x8xf32, #tpu.memory_space<vmem>>, %arg2: memref<1x8xf32, #tpu.memory_space<vmem>>, %arg3: memref<3xf32, #tpu.memory_space<smem>>, %arg4: memref<1x8xf32, #tpu.memory_space<vmem>>) attributes {dimension_semantics = [], scalar_prefetch = 0 : i64, scratch_operands = 0 : i64, tpu.core_type = #tpu.core_type<tc>} {
    %c0 = arith.constant 0 : index
    %c0_0 = arith.constant 0 : index
    %0 = vector.load %arg0[%c0, %c0_0] : memref<4x8xi32, #tpu.memory_space<vmem>>, vector<4x8xi32>
    %c0_1 = arith.constant 0 : index
    %c0_2 = arith.constant 0 : index
    %1 = vector.load %arg1[%c0_1, %c0_2] : memref<4x8xf32, #tpu.memory_space<vmem>>, vector<4x8xf32>
    %c0_3 = arith.constant 0 : index
    %c0_4 = arith.constant 0 : index
    %2 = vector.load %arg2[%c0_3, %c0_4] : memref<1x8xf32, #tpu.memory_space<vmem>>, vector<1x8xf32>
    %3 = tpu.iota {dimensions = array<i32: 0>} : vector<4x8xi32>
    %cst = arith.constant dense<0xFF800000> : vector<8xf32>
    %4 = vector.multi_reduction <maximumf>, %1, %cst [0] : vector<4x8xf32> to vector<8xf32>
    %5 = vector.shape_cast %4 : vector<8xf32> to vector<1x8xf32>
    %6 = vector.broadcast %5 : vector<1x8xf32> to vector<4x8xf32>
    %7 = arith.cmpf oeq, %1, %6 : vector<4x8xf32>
    %c4_i32 = arith.constant 4 : i32
    %8 = vector.broadcast %c4_i32 : i32 to vector<4x8xi32>
    %9 = arith.select %7, %3, %8 : vector<4x8xi1>, vector<4x8xi32>
    %cst_5 = arith.constant dense<2147483647> : vector<8xi32>
    %10 = vector.multi_reduction <minsi>, %9, %cst_5 [0] : vector<4x8xi32> to vector<8xi32>
    %11 = vector.shape_cast %10 : vector<8xi32> to vector<1x8xi32>
    %12 = vector.broadcast %11 : vector<1x8xi32> to vector<4x8xi32>
    %13 = arith.cmpi eq, %3, %12 : vector<4x8xi32>
    %14 = arith.extui %13 : vector<4x8xi1> to vector<4x8xi32>
    %15 = arith.sitofp %14 : vector<4x8xi32> to vector<4x8xf32>
    %16 = arith.truncf %15 : vector<4x8xf32> to vector<4x8xbf16>
    %17 = tpu.iota {dimensions = array<i32: 0>} : vector<8x8xi32>
    %18 = vector.extract_strided_slice %0 {offsets = [0, 0], sizes = [1, 8], strides = [1, 1]} : vector<4x8xi32> to vector<1x8xi32>
    %19 = vector.broadcast %18 : vector<1x8xi32> to vector<8x8xi32>
    %20 = arith.cmpi eq, %17, %19 : vector<8x8xi32>
    %21 = arith.extui %20 : vector<8x8xi1> to vector<8x8xi32>
    %22 = arith.sitofp %21 : vector<8x8xi32> to vector<8x8xf32>
    %23 = arith.truncf %22 : vector<8x8xf32> to vector<8x8xbf16>
    %24 = vector.extract_strided_slice %0 {offsets = [1, 0], sizes = [1, 8], strides = [1, 1]} : vector<4x8xi32> to vector<1x8xi32>
    %25 = vector.broadcast %24 : vector<1x8xi32> to vector<8x8xi32>
    %26 = arith.cmpi eq, %17, %25 : vector<8x8xi32>
    %27 = arith.extui %26 : vector<8x8xi1> to vector<8x8xi32>
    %28 = arith.sitofp %27 : vector<8x8xi32> to vector<8x8xf32>
    %29 = arith.truncf %28 : vector<8x8xf32> to vector<8x8xbf16>
    %30 = arith.addf %23, %29 : vector<8x8xbf16>
    %31 = vector.extract_strided_slice %0 {offsets = [2, 0], sizes = [1, 8], strides = [1, 1]} : vector<4x8xi32> to vector<1x8xi32>
    %32 = vector.broadcast %31 : vector<1x8xi32> to vector<8x8xi32>
    %33 = arith.cmpi eq, %17, %32 : vector<8x8xi32>
    %34 = arith.extui %33 : vector<8x8xi1> to vector<8x8xi32>
    %35 = arith.sitofp %34 : vector<8x8xi32> to vector<8x8xf32>
    %36 = arith.truncf %35 : vector<8x8xf32> to vector<8x8xbf16>
    %37 = arith.addf %30, %36 : vector<8x8xbf16>
    %38 = vector.extract_strided_slice %0 {offsets = [3, 0], sizes = [1, 8], strides = [1, 1]} : vector<4x8xi32> to vector<1x8xi32>
    %39 = vector.broadcast %38 : vector<1x8xi32> to vector<8x8xi32>
    %40 = arith.cmpi eq, %17, %39 : vector<8x8xi32>
    %41 = arith.extui %40 : vector<8x8xi1> to vector<8x8xi32>
    %42 = arith.sitofp %41 : vector<8x8xi32> to vector<8x8xf32>
    %43 = arith.truncf %42 : vector<8x8xf32> to vector<8x8xbf16>
    %44 = arith.addf %37, %43 : vector<8x8xbf16>
    %cst_6 = arith.constant dense<0.000000e+00> : vector<4x8xf32>
    %45 = tpu.matmul %16, %44, %cst_6 {dimension_numbers = #tpu.dot_dimension_numbers<[1], [0], [0], [1], [0, 0, 1, 1], [], []>} : vector<4x8xbf16>, vector<8x8xbf16>, vector<4x8xf32> -> vector<4x8xf32>
    %cst_7 = arith.constant dense<0xFF800000> : vector<8xf32>
    %46 = vector.multi_reduction <maximumf>, %45, %cst_7 [0] : vector<4x8xf32> to vector<8xf32>
    %47 = vector.shape_cast %46 : vector<8xf32> to vector<1x8xf32>
    %48 = vector.broadcast %47 : vector<1x8xf32> to vector<4x8xf32>
    %49 = arith.cmpf oeq, %45, %48 : vector<4x8xf32>
    %c4_i32_8 = arith.constant 4 : i32
    %50 = vector.broadcast %c4_i32_8 : i32 to vector<4x8xi32>
    %51 = arith.select %49, %3, %50 : vector<4x8xi1>, vector<4x8xi32>
    %cst_9 = arith.constant dense<2147483647> : vector<8xi32>
    %52 = vector.multi_reduction <minsi>, %51, %cst_9 [0] : vector<4x8xi32> to vector<8xi32>
    %53 = vector.shape_cast %52 : vector<8xi32> to vector<1x8xi32>
    %54 = vector.broadcast %53 : vector<1x8xi32> to vector<4x8xi32>
    %55 = arith.cmpi eq, %3, %54 : vector<4x8xi32>
    %56 = arith.extui %55 : vector<4x8xi1> to vector<4x8xi32>
    %57 = arith.sitofp %56 : vector<4x8xi32> to vector<4x8xf32>
    %58 = arith.mulf %57, %1 : vector<4x8xf32>
    %cst_10 = arith.constant dense<0.000000e+00> : vector<8xf32>
    %59 = vector.multi_reduction <add>, %58, %cst_10 [0] : vector<4x8xf32> to vector<8xf32>
    %60 = vector.shape_cast %59 : vector<8xf32> to vector<1x8xf32>
    %cst_11 = arith.constant 9.99999971E-10 : f32
    %61 = vector.broadcast %cst_11 : f32 to vector<1x8xf32>
    %62 = arith.addf %60, %61 : vector<1x8xf32>
    %63 = math.log %62 : vector<1x8xf32>
    %cst_12 = arith.constant 0.000000e+00 : f32
    %64 = vector.broadcast %cst_12 : f32 to vector<1x8xf32>
    %65 = arith.subf %64, %63 : vector<1x8xf32>
    %c0_13 = arith.constant 0 : index
    %c0_14 = arith.constant 0 : index
    %66 = vector.load %arg4[%c0_13, %c0_14] : memref<1x8xf32, #tpu.memory_space<vmem>>, vector<1x8xf32>
    tpu.vector_store %arg4[%c0_13, %c0_14], %65 {strides = array<i32>} : memref<1x8xf32, #tpu.memory_space<vmem>>, vector<1x8xf32>,
    %67 = arith.mulf %2, %65 : vector<1x8xf32>
    %68 = vector.shape_cast %67 : vector<1x8xf32> to vector<1x1x8xf32>
    %cst_15 = arith.constant dense<0.000000e+00> : vector<1xf32>
    %69 = vector.multi_reduction <add>, %68, %cst_15 [1, 2] : vector<1x1x8xf32> to vector<1xf32>
    %70 = vector.shape_cast %69 : vector<1xf32> to vector<1x1x1xf32>
    %71 = vector.extract %70[0, 0, 0] : f32 from vector<1x1x1xf32>
    %cst_16 = arith.constant 8.000000e+00 : f32
    %72 = arith.divf %71, %cst_16 : f32
    %73 = tpu.iota {dimensions = array<i32: 1>} : vector<4x8xi32>
    %cst_17 = arith.constant dense<0xFF800000> : vector<4xf32>
    %74 = vector.multi_reduction <maximumf>, %1, %cst_17 [1] : vector<4x8xf32> to vector<4xf32>
    %75 = vector.shape_cast %74 : vector<4xf32> to vector<4x1xf32>
    %76 = vector.shape_cast %75 : vector<4x1xf32> to vector<1x4x1xf32>
    %cst_18 = arith.constant dense<0.000000e+00> : vector<1xf32>
    %77 = vector.multi_reduction <add>, %76, %cst_18 [1, 2] : vector<1x4x1xf32> to vector<1xf32>
    %78 = vector.shape_cast %77 : vector<1xf32> to vector<1x1x1xf32>
    %79 = vector.extract %78[0, 0, 0] : f32 from vector<1x1x1xf32>
    %cst_19 = arith.constant 0.000000e+00 : f32
    %80 = arith.addf %cst_19, %79 : f32
    %81 = vector.broadcast %75 : vector<4x1xf32> to vector<4x8xf32>
    %82 = arith.cmpf oeq, %1, %81 : vector<4x8xf32>
    %c8_i32 = arith.constant 8 : i32
    %83 = vector.broadcast %c8_i32 : i32 to vector<4x8xi32>
    %84 = arith.select %82, %73, %83 : vector<4x8xi1>, vector<4x8xi32>
    %cst_20 = arith.constant dense<2147483647> : vector<4xi32>
    %85 = vector.multi_reduction <minsi>, %84, %cst_20 [1] : vector<4x8xi32> to vector<4xi32>
    %86 = vector.shape_cast %85 : vector<4xi32> to vector<4x1xi32>
    %87 = vector.broadcast %86 : vector<4x1xi32> to vector<4x8xi32>
    %88 = arith.cmpi eq, %73, %87 : vector<4x8xi32>
    %cst_21 = arith.constant 0xFF800000 : f32
    %89 = vector.broadcast %cst_21 : f32 to vector<4x8xf32>
    %90 = arith.select %88, %89, %1 : vector<4x8xi1>, vector<4x8xf32>
    %cst_22 = arith.constant dense<0xFF800000> : vector<4xf32>
    %91 = vector.multi_reduction <maximumf>, %90, %cst_22 [1] : vector<4x8xf32> to vector<4xf32>
    %92 = vector.shape_cast %91 : vector<4xf32> to vector<4x1xf32>
    %93 = vector.shape_cast %92 : vector<4x1xf32> to vector<1x4x1xf32>
    %cst_23 = arith.constant dense<0.000000e+00> : vector<1xf32>
    %94 = vector.multi_reduction <add>, %93, %cst_23 [1, 2] : vector<1x4x1xf32> to vector<1xf32>
    %95 = vector.shape_cast %94 : vector<1xf32> to vector<1x1x1xf32>
    %96 = vector.extract %95[0, 0, 0] : f32 from vector<1x1x1xf32>
    %97 = arith.addf %80, %96 : f32
    %cst_24 = arith.constant 0.000000e+00 : f32
    %98 = arith.subf %cst_24, %97 : f32
    %cst_25 = arith.constant 8.000000e+00 : f32
    %99 = arith.divf %98, %cst_25 : f32
    %cst_26 = arith.constant 7.000000e+00 : f32
    %100 = arith.mulf %cst_26, %99 : f32
    %101 = arith.addf %100, %72 : f32
    %c0_27 = arith.constant 0 : index
    %102 = memref.load %arg3[%c0_27] : memref<3xf32, #tpu.memory_space<smem>>
    memref.store %101, %arg3[%c0_27] : memref<3xf32, #tpu.memory_space<smem>>
    %c1 = arith.constant 1 : index
    %103 = memref.load %arg3[%c1] : memref<3xf32, #tpu.memory_space<smem>>
    memref.store %72, %arg3[%c1] : memref<3xf32, #tpu.memory_space<smem>>
    %c2 = arith.constant 2 : index
    %104 = memref.load %arg3[%c2] : memref<3xf32, #tpu.memory_space<smem>>
    memref.store %99, %arg3[%c2] : memref<3xf32, #tpu.memory_space<smem>>
    return
  }
}

</mosaic_0001>

<bundles_post_ra>
// kernel: tpu_custom_call.1
= control target key start
LH: loop header
LB: loop body
LE: loop exit
PB: predicated region body
PF: predicated region fallthrough
CT: control target
= control target key end

     0   :  { %10 = vsyncpa [#allocation3], 0  ;;  %s541_s0 = inlined_call_operand.hbm [shape: s32[4,8], index: 0, kind: input, shape index: {}]   ;;  %s542_s1 = inlined_call_operand.hbm [shape: f32[4,8], index: 1, kind: input, shape index: {}]   ;;  %s543_s2 = inlined_call_operand.vmem [shape: f32[1,8], index: 2, kind: input, shape index: {}]   ;;  %s544_s3 = inlined_call_operand.hbm [shape: f32[3], index: 3, kind: output, shape index: {0}]   ;;  %s545_s4 = inlined_call_operand.hbm [shape: f32[1,8], index: 4, kind: output, shape index: {1}]  }
   0x1   :  { %11 = vsyncpa [#allocation7], 0 }
   0x2   :  { %12 = vsyncpa [#allocation5], 0 }
   0x3   :  { %13 = vsyncpa [#allocation4], 0  ;;  %s408_s15 = smov [#allocation2]   ;;  %s409_s17 = smov [#allocation6]  }
   0x4   :  { %s20_s16 = sshll.u32 %s408_s15, 4  ;;  %s30_s18 = sshll.u32 %s409_s17, 4  ;;  %s21_s16 = int_to_ptr.vmem [resolvable:$true] %s20_s16  ;;  %s31_s18 = int_to_ptr.vmem [resolvable:$true] %s30_s18 }
   0x5   :  { %s324_s21 = scalar_lea.hbm %s541_s0, 64 }
   0x6   :  { %p325_p0 = scmp.ne.s32.totalorder %s541_s0, %s324_s21  ;;  %p328_p1 = scmp.lt.u32.totalorder %s324_s21, %s541_s0 }
   0x8   :  { %p330_p2 = pnand %p328_p1, %p325_p0 }
   0xa   :  { %333 = shalt.err (!%p330_p2)
}
   0xb   :  { %s334_s26 = scalar_lea.vmem %s21_s16, 64  ;;  %p339_p4 = scmp.lt.s32.totalorder %s21_s16, %s21_s16 }
   0xc   :  { %p335_p3 = scmp.ne.s32.totalorder %s21_s16, %s334_s26  ;;  %p340_p5 = scmp.lt.s32.totalorder %s334_s26, %s334_s26 }
   0xe   :  { %p341_p6 = por %p340_p5, %p339_p4 }
  0x10   :  { %p342_p7 = pnand %p341_p6, %p335_p3 }
  0x12   :  { %345 = shalt.err (!%p342_p7)
}
  0x13   :  { %23 = dma.hbm_to_vmem [thread:$0]  %s541_s0, 64, %s21_s16, [#allocation3]  }
  0x14   :  { %s346_s5 = scalar_lea.hbm %s542_s1, 64 }
  0x15   :  { %p347_p8 = scmp.ne.s32.totalorder %s542_s1, %s346_s5  ;;  %p350_p9 = scmp.lt.u32.totalorder %s346_s5, %s542_s1 }
  0x17   :  { %p352_p10 = pnand %p350_p9, %p347_p8 }
  0x19   :  { %355 = shalt.err (!%p352_p10)
}
  0x1a   :  { %s356_s10 = scalar_lea.vmem %s31_s18, 64  ;;  %p361_p12 = scmp.lt.s32.totalorder %s31_s18, %s31_s18 }
  0x1b   :  { %p357_p11 = scmp.ne.s32.totalorder %s31_s18, %s356_s10  ;;  %p362_p13 = scmp.lt.s32.totalorder %s356_s10, %s356_s10 }
  0x1d   :  { %p363_p0 = por %p362_p13, %p361_p12 }
  0x1f   :  { %p364_p1 = pnand %p363_p0, %p357_p11 }
  0x21   :  { %367 = shalt.err (!%p364_p1)
}
  0x22   :  { %33 = dma.hbm_to_vmem [thread:$0]  %s542_s1, 64, %s31_s18, [#allocation7]  }
  0x23   :  { %400 = dma.done.wait [#allocation3], 64  }
  0x24   :  { %401 = vsyncadd [#allocation3], 4294967232 }
  0x25   :  { %402 = dma.done.wait [#allocation7], 64  }
  0x26   :  { %403 = vsyncadd [#allocation7], 4294967232  ;;  %vm48_vm0 = vcmask 60416   ;;  %v463_v0 = vld [vmem:[#allocation6] sm:$0xf]  ;;  %v46_v8 = vlaneseq  ;;  %v410_v14 = vmov 0.0  }
  0x27   :  { %v49_v1 = vsel %vm48_vm0, %v463_v0, -inf  ;;  %v43_v10 = vld [vmem:[#allocation2] sm:$0xf]  ;;  %304 = vmatprep.subr.bf16.mxu0 %v410_v14  ;;  %vm411_vm2 = vmmov 0   ;;  %vm111_vm8 = vcmask 1043456   ;;  %vm107_vm12 = vcmask 64512  }
  0x28   :  { %207 = vmax.xlane.f32.xlu0 %v49_v1  ;;  %v50_v2 = vrot.slane %v49_v1, 4  ;;  %v467_v9 = vshrl.u32 %v46_v8, 7  ;;  %306 = vmatprep.mubr.msk.bf16.mxu0 %vm411_vm2, %v410_v14  ;;  %v488_v42 = vand.u32 127, %v46_v8  ;;  %s412_s14 = smov [#allocation9]  }
  0x29   :  { %s280_s15 = sshll.u32 %s412_s14, 4  ;;  %s281_s15 = int_to_ptr.vmem [resolvable:$true] %s280_s15 }
  0x2a   :  { %v51_v3 = vmax.f32 %v49_v1, %v50_v2  ;;  %v74_v11 = vsub.s32 0, %v467_v9  ;;  %v82_v12 = vsub.s32 1, %v467_v9  ;;  %v91_v13 = vsub.s32 2, %v467_v9  ;;  %s368_s16 = scalar_lea.vmem %s281_s15, 16  ;;  %s372_s17 = scalar_lea.vmem %s281_s15, 32 }
  0x2b   :  { %v100_v15 = vsub.s32 3, %v467_v9  ;;  %p369_p2 = scmp.ne.s32.totalorder %s281_s15, %s368_s16  ;;  %p373_p3 = scmp.lt.s32.totalorder %s281_s15, %s281_s15 }
  0x2c   :  { %v52_v4 = vrot.slane %v51_v3, 2  ;;  %v75_v17 = vrot.slane %v43_v10, %v74_v11  ;;  %v83_v18 = vrot.slane %v43_v10, %v82_v12  ;;  %v92_v19 = vrot.slane %v43_v10, %v91_v13  ;;  %p374_p4 = scmp.lt.s32.totalorder %s372_s17, %s368_s16 }
  0x2d   :  { %v101_v21 = vrot.slane %v43_v10, %v100_v15 }
  0x2e   :  { %v53_v5 = vmax.f32 %v51_v3, %v52_v4  ;;  %vm76_vm3 = vcmp.eq.s32.totalorder %v467_v9, %v75_v17  ;;  %vm84_vm4 = vcmp.eq.s32.totalorder %v467_v9, %v83_v18  ;;  %vm93_vm5 = vcmp.eq.s32.totalorder %v467_v9, %v92_v19  ;;  %p375_p5 = por %p374_p4, %p373_p3 }
  0x2f   :  { %v296_v23 = vsel %vm76_vm3, 1.0, %v410_v14  ;;  %v297_v24 = vsel %vm84_vm4, 1.0, %v410_v14  ;;  %v298_v25 = vsel %vm93_vm5, 1.0, %v410_v14  ;;  %vm102_vm6 = vcmp.eq.s32.totalorder %v467_v9, %v101_v21 }
  0x30   :  { %v54_v6 = vrot.slane %v53_v5, 1  ;;  %v79_v26 = vpack.c.bf16 %v296_v23, %v296_v23  ;;  %v87_v27 = vpack.c.bf16 %v297_v24, %v297_v24  ;;  %v96_v28 = vpack.c.bf16 %v298_v25, %v298_v25  ;;  %p376_p6 = pnand %p375_p5, %p369_p2 }
  0x31   :  { %v299_v29 = vsel %vm102_vm6, 1.0, %v410_v14  ;;  %vm189_vm5 = vcmask 57344  }
  0x32   :  { %v55_v7 = vmax.f32 %v53_v5, %v54_v6  ;;  %v88_v30 = vadd.bf16 %v87_v27, %v79_v26  ;;  %v105_v31 = vpack.c.bf16 %v299_v29, %v299_v29 }
  0x34   :  { %vm56_vm1 = vcmp.eq.f32.partialorder %v463_v0, %v55_v7  ;;  %v97_v34 = vadd.bf16 %v96_v28, %v88_v30 }
  0x35   :  { %v57_v16 = vsel %vm56_vm1, %v467_v9, 4 }
  0x36   :  { %v58_v20 = vsel %vm48_vm0, %v57_v16, 2147483647  ;;  %v106_v35 = vadd.bf16 %v105_v31, %v97_v34 }
  0x37   :  { %v59_v22 = vrot.slane %v58_v20, 4 }
  0x38   :  { %v113_v38 = vsel %vm111_vm8, %v106_v35, 0 }
  0x39   :  { %vm60_vm7 = vcmp.lt.s32.totalorder %v58_v20, %v59_v22  ;;  %305 = vmatpush3.bf16.msra.mxu0 %v113_v38 }
  0x3a   :  { %v61_v32 = vsel %vm60_vm7, %v58_v20, %v59_v22  ;;  %v45_v20 = vld [vmem:[%s543_s2] sm:$0x1]  ;;  %vm209_vm7 = vcmask 3072  }
  0x3b   :  { %v62_v33 = vrot.slane %v61_v32, 2 }
  0x3d   :  { %vm63_vm9 = vcmp.lt.s32.totalorder %v61_v32, %v62_v33 }
  0x3e   :  { %v64_v36 = vsel %vm63_vm9, %v61_v32, %v62_v33 }
  0x3f   :  { %v65_v37 = vrot.slane %v64_v36, 1 }
  0x41   :  { %vm66_vm10 = vcmp.lt.s32.totalorder %v64_v36, %v65_v37 }
  0x42   :  { %v67_v39 = vsel %vm66_vm10, %v64_v36, %v65_v37 }
  0x43   :  { %vm68_vm11 = vcmp.eq.s32.totalorder %v467_v9, %v67_v39 }
  0x44   :  { %v295_v40 = vsel %vm68_vm11, 1.0, %v410_v14 }
  0x45   :  { %v71_v41 = vpack.c.bf16 %v295_v40, %v295_v40 }
  0x47   :  { %307 = vmatmul.mubr.msk.bf16.vlgmr.msra.gmra.mrb[0].mxu0 %vm107_vm12, %v71_v41 }
  0xb5   :  { %v490_v43 = vpop.xlane.xlu0 %207 }
  0xb6   :  { %vm221_vm13 = vcmp.eq.f32.partialorder %v463_v0, %v490_v43  ;;  %v210_v31 = vsel %vm209_vm7, %v490_v43, 0.0 }
  0xb7   :  { %v222_v44 = vsel %vm221_vm13, %v488_v42, 8 }
  0xb8   :  { %v223_v45 = vsel %vm48_vm0, %v222_v44, 2147483647 }
  0xb9   :  { %v225_v46 = vshra.s32 %v223_v45, 16  ;;  %v224_v6 = vand.u32 65535, %v223_v45 }
  0xbb   :  { %v227_v47 = vcvt.s32.f32 %v225_v46  ;;  %v226_v12 = vcvt.s32.f32 %v224_v6 }
  0xbd   :  { %228 = vmin.xlane.f32.xlu0 %v227_v47 }
 0x11a   :  { %v149_v48 = vpop.f32.mrb[0].mxu0 }
 0x11b   :  { %v155_v49 = vsel %vm48_vm0, %v149_v48, -inf  ;;  %v308_v50 = vpop.f32.mrb[1].mxu0 }
 0x11c   :  { %v156_v51 = vrot.slane %v155_v49, 4  ;;  %v152_v52 = vpop.f32.mrb[2].mxu0 }
 0x11d   :  { %v309_v53 = vpop.f32.mrb[3].mxu0 }
 0x11e   :  { %v157_v54 = vmax.f32 %v155_v49, %v156_v51 }
 0x120   :  { %v158_v55 = vrot.slane %v157_v54, 2 }
 0x122   :  { %v159_v56 = vmax.f32 %v157_v54, %v158_v55 }
 0x124   :  { %v160_v57 = vrot.slane %v159_v56, 1 }
 0x126   :  { %v161_v58 = vmax.f32 %v159_v56, %v160_v57 }
 0x128   :  { %vm162_vm14 = vcmp.eq.f32.partialorder %v149_v48, %v161_v58 }
 0x129   :  { %v163_v59 = vsel %vm162_vm14, %v467_v9, 4 }
 0x12a   :  { %v164_v60 = vsel %vm48_vm0, %v163_v59, 2147483647 }
 0x12b   :  { %v165_v61 = vrot.slane %v164_v60, 4 }
 0x12d   :  { %vm166_vm15 = vcmp.lt.s32.totalorder %v164_v60, %v165_v61 }
 0x12e   :  { %v167_v62 = vsel %vm166_vm15, %v164_v60, %v165_v61 }
 0x12f   :  { %v168_v63 = vrot.slane %v167_v62, 2 }
 0x131   :  { %vm169_vm1 = vcmp.lt.s32.totalorder %v167_v62, %v168_v63 }
 0x132   :  { %v170_v1 = vsel %vm169_vm1, %v167_v62, %v168_v63 }
 0x133   :  { %v171_v2 = vrot.slane %v170_v1, 1 }
 0x135   :  { %vm172_vm2 = vcmp.lt.s32.totalorder %v170_v1, %v171_v2 }
 0x136   :  { %v173_v3 = vsel %vm172_vm2, %v170_v1, %v171_v2 }
 0x137   :  { %vm174_vm3 = vcmp.eq.s32.totalorder %v467_v9, %v173_v3 }
 0x138   :  { %v301_v4 = vsel %vm174_vm3, 1.0, %v410_v14 }
 0x139   :  { %v177_v5 = vmul.f32 %v301_v4, %v463_v0 }
 0x13b   :  { %v178_v7 = vsel %vm48_vm0, %v177_v5, 0.0 }
 0x13c   :  { %v179_v8 = vrot.slane %v178_v7, 4 }
 0x13e   :  { %v180_v10 = vadd.f32 %v179_v8, %v178_v7 }
 0x140   :  { %v181_v13 = vrot.slane %v180_v10, 2 }
 0x142   :  { %v182_v16 = vadd.f32 %v181_v13, %v180_v10 }
 0x144   :  { %v183_v17 = vrot.slane %v182_v16, 1 }
 0x146   :  { %v184_v18 = vadd.f32 %v183_v17, %v182_v16 }
 0x148   :  { %v185_v19 = vadd.f32 1e-09, %v184_v18 }
 0x14a   :  { %v229_v11 = vpop.xlane.xlu0 %228  ;;  %322 = vlog2.f32 %v185_v19 }
 0x14b   :  { %vm230_vm4 = vcmp.eq.f32.partialorder %v227_v47, %v229_v11  ;;  %v235_v24 = vcvt.f32.s32 %v229_v11 }
 0x14c   :  { %v231_v15 = vsel %vm230_vm4, %v226_v12, inf }
 0x14d   :  { %232 = vmin.xlane.f32.xlu1 %v231_v15  ;;  %v236_v26 = vshll.u32 %v235_v24, 16 }
 0x154   :  { %v323_v9 = vpop.eup %322 }
 0x155   :  { %v187_v14 = vmul.f32 0.6931472, %v323_v9 }
 0x157   :  { %v188_v21 = vsub.f32 0.0, %v187_v14 }
 0x159   :  { %v191_v22 = vmul.f32 %v188_v21, %v45_v20  ;;  %190 = vst.msk [vmem:[#allocation9] sm:$0x1] %vm189_vm5, %v188_v21 }
 0x15b   :  { %v192_v23 = vsel %vm189_vm5, %v191_v22, 0.0 }
 0x15c   :  { %193 = vadd.xlane.f32.xlu0 %v192_v23 }
 0x1da   :  { %v233_v25 = vpop.xlane.xlu1 %232 }
 0x1db   :  { %v234_v27 = vcvt.f32.s32 %v233_v25 }
 0x1dd   :  { %v237_v28 = vadd.s32 %v236_v26, %v234_v27 }
 0x1df   :  { %vm238_vm6 = vcmp.eq.s32.totalorder %v488_v42, %v237_v28 }
 0x1e0   :  { %v239_v29 = vsel %vm238_vm6, -inf, %v463_v0 }
 0x1e1   :  { %v240_v30 = vsel %vm48_vm0, %v239_v29, -inf }
 0x1e2   :  { %241 = vmax.xlane.f32.xlu1 %v240_v30 }
 0x1e6   :  { %211 = vadd.xlane.f32.xlu1 %v210_v31 }
 0x1e9   :  { %v194_v32 = vpop.xlane.xlu0 %193 }
 0x1ea   :  { %v195_v33 = vrot.slane %v194_v32, 4 }
 0x1ec   :  { %v196_v34 = vadd.f32 %v195_v33, %v194_v32 }
 0x1ee   :  { %v197_v35 = vrot.slane %v196_v34, 2 }
 0x1f0   :  { %v198_v36 = vadd.f32 %v197_v35, %v196_v34 }
 0x1f2   :  { %v199_v37 = vrot.slane %v198_v36, 1 }
 0x1f4   :  { %v200_v38 = vadd.f32 %v199_v37, %v198_v36 }
 0x1f6   :  { %310 = vpush %v200_v38 }
 0x227   :  { %s510_s2 = spop %310 }
 0x228   :  { %s204_s13 = smul.f32 0.125, %s510_s2 }
 0x22a   :  { %263 = sst [smem:[#allocation8 + $0x1]] %s204_s13 }
 0x26f   :  { %v242_v0 = vpop.xlane.xlu1 %241 }
 0x270   :  { %v243_v39 = vsel %vm209_vm7, %v242_v0, 0.0 }
 0x271   :  { %244 = vadd.xlane.f32.xlu0 %v243_v39 }
 0x273   :  { %v212_v40 = vpop.xlane.xlu1 %211 }
 0x274   :  { %v213_v41 = vrot.slane %v212_v40, 4 }
 0x276   :  { %v214_v42 = vadd.f32 %v213_v41, %v212_v40 }
 0x278   :  { %v215_v43 = vrot.slane %v214_v42, 2 }
 0x27a   :  { %v216_v44 = vadd.f32 %v215_v43, %v214_v42 }
 0x27c   :  { %v217_v45 = vrot.slane %v216_v44, 1 }
 0x27e   :  { %v218_v46 = vadd.f32 %v217_v45, %v216_v44 }
 0x280   :  { %312 = vpush %v218_v46 }
 0x281   :  { %379 = shalt.err (!%p376_p6)
}
 0x282   :  { %s380_s20 = scalar_lea.hbm %s545_s4, 16 }
 0x283   :  { %p381_p7 = scmp.ne.s32.totalorder %s545_s4, %s380_s20  ;;  %p384_p8 = scmp.lt.u32.totalorder %s380_s20, %s545_s4 }
 0x285   :  { %p386_p9 = pnand %p384_p8, %p381_p7 }
 0x287   :  { %389 = shalt.err (!%p386_p9)
}
 0x288   :  { %283 = dma.vmem_to_hbm [thread:$0]  %s281_s15, 16, %s545_s4, [#allocation4]  }
 0x289   :  { %s390_s9 = scalar_lea.hbm %s544_s3, 16 }
 0x28a   :  { %p391_p10 = scmp.ne.s32.totalorder %s544_s3, %s390_s9  ;;  %p394_p11 = scmp.lt.u32.totalorder %s390_s9, %s544_s3 }
 0x28c   :  { %p396_p12 = pnand %p394_p11, %p391_p10 }
 0x2b1   :  { %s313_s27 = spop %312 }
 0x2fe   :  { %v245_v47 = vpop.xlane.xlu0 %244 }
 0x2ff   :  { %v246_v48 = vrot.slane %v245_v47, 4 }
 0x301   :  { %v247_v49 = vadd.f32 %v246_v48, %v245_v47 }
 0x303   :  { %v248_v50 = vrot.slane %v247_v49, 2 }
 0x305   :  { %v249_v51 = vadd.f32 %v248_v50, %v247_v49 }
 0x307   :  { %v250_v52 = vrot.slane %v249_v51, 1 }
 0x309   :  { %v251_v53 = vadd.f32 %v250_v52, %v249_v51 }
 0x30b   :  { %314 = vpush %v251_v53 }
 0x33c   :  { %s315_s28 = spop %314 }
 0x33d   :  { %s253_s29 = sadd.f32 %s315_s28, %s313_s27 }
 0x33f   :  { %s254_s30 = ssub.f32 0.0, %s253_s29 }
 0x341   :  { %s257_s5 = smul.f32 0.125, %s254_s30 }
 0x343   :  { %s258_s6 = smul.f32 7.0, %s257_s5  ;;  %265 = sst [smem:[#allocation8 + $0x2]] %s257_s5 }
 0x345   :  { %s259_s7 = sadd.f32 %s258_s6, %s204_s13 }
 0x347   :  { %261 = sst [smem:[#allocation8]] %s259_s7 }
 0x348   :  { %399 = shalt.err (!%p396_p12)
}
 0x349   :  { %s413_s12 = smov [#allocation8]  }
 0x34a   :  { %273 = dma.smem_to_hbm %s413_s12, 16, %s544_s3, [#allocation5]  }
 0x34b   :  { %404 = dma.done.wait [#allocation5], 16  }
 0x34c   :  { %405 = vsyncadd [#allocation5], 4294967280 }
 0x34d   :  { %406 = dma.done.wait [#allocation4], 16  }
 0x34e   :  { %407 = vsyncadd [#allocation4], 4294967280 }
 0x34f   :  { %290 = sfence }
 0x350   :  { %291 = vsyncpa [#allocation3], 1 }
 0x351   :  { %292 = vsyncpa [#allocation7], 1 }
 0x352   :  { %293 = vsyncpa [#allocation4], 1 }
 0x353   :  { %294 = vsyncpa [#allocation5], 1 }

</bundles_post_ra>
